<compile_context>
chip_gen: v7x
topology: tpu7x:2x2x1
jax: 0.10.0
libtpu: 0.0.40
codegen_flags: <defaults>
</compile_context>

<pallas_src>
import jax
import jax.numpy as jnp
from jax.experimental import pallas as pl
from jax.experimental.pallas import tpu as pltpu


_MAX_TILE_BYTES = 8 << 20   # upper bound on one input tile
_MIN_TILE_BYTES = 1 << 20


def _vmem_limit_bytes():
    """Scoped-VMEM budget: half of physical VMEM, capped at 64 MiB.

    v5e/v6e (128 MiB physical) -> 64 MiB; v7x (64 MiB per TC) -> 32 MiB.
    """
    try:
        phys = pltpu.get_tpu_info().vmem_capacity_bytes
    except Exception:
        phys = 64 << 20            # v7x per-TC physical; safe lower bound
    return int(min(phys // 2, 64 << 20))


def _choose_block_rows(rows, lane, itemsize, vmem_limit):
    """Tile height: big enough to hide per-step overhead, small enough that
    the double-buffered (input + output) footprint stays inside the scoped
    VMEM budget, and the grid keeps >=4 steps when possible (2 per v7x TC)."""
    if rows <= 8:
        return rows                 # single block equal to the full array
    tile_bytes = max(_MIN_TILE_BYTES, min(_MAX_TILE_BYTES, vmem_limit // 6))
    max_rows = max(8, (tile_bytes // (lane * itemsize)) // 8 * 8)
    target = max(8, pl.cdiv(pl.cdiv(rows, 4), 8) * 8)     # aim for >=4 steps
    return max(8, min(max_rows, target, (rows // 8) * 8))


def _logreg_kernel(w_ref, b_ref, x_ref, o_ref):
    # w_ref, b_ref: (1, 1) f32 scalars in SMEM.
    # x_ref, o_ref: (block_rows, lane) tiles in VMEM (native dtype).
    w = w_ref[0, 0]
    b = b_ref[0, 0]
    z = x_ref[...].astype(jnp.float32) * w + b            # Linear(1, 1)
    # Exact sigmoid: exp on the EUP, divide on the VPU -- both fully hidden
    # under the HBM-bound DMA stream, so exactness is free.
    y = 1.0 / (1.0 + jnp.exp(-z))
    o_ref[...] = y.astype(o_ref.dtype)


def _pallas_forward(x, w, b):
    """Pallas path.  x: (N, 1) float; w: (1, 1); b: (1,) -> (N, 1) x.dtype."""
    n = x.shape[0]
    dtype = x.dtype

    # Lane-dense repack.  Prefer a zero-copy (contiguous, metadata-only)
    # reshape with the widest lane dimension that divides N; only pad the
    # tail to the next multiple of 128 when N forces it.
    lane = next((lw for lw in (1024, 512, 256, 128) if n % lw == 0), None)
    padded = lane is None
    if padded:
        # TODO(synk): a manual-DMA path (memory_space=pl.ANY) could avoid
        # this tail pad / output slice for N not a multiple of 128.
        lane = 128
        rows = pl.cdiv(n, lane)
        x2d = jnp.pad(x.reshape(-1), (0, rows * lane - n)).reshape(rows, lane)
    else:
        rows = n // lane
        x2d = x.reshape(rows, lane)

    vmem_limit = _vmem_limit_bytes()
    block_rows = _choose_block_rows(rows, lane, dtype.itemsize, vmem_limit)
    grid = (pl.cdiv(rows, block_rows),)      # last block may be ragged

    w2d = w.reshape(1, 1).astype(jnp.float32)
    b2d = b.reshape(1, 1).astype(jnp.float32)

    out2d = pl.pallas_call(
        _logreg_kernel,
        out_shape=jax.ShapeDtypeStruct((rows, lane), dtype),
        grid=grid,
        in_specs=[
            # Scalar parameters live in SMEM (no padded VMEM tiles / DMA).
            pl.BlockSpec(memory_space=pltpu.MemorySpace.SMEM),
            pl.BlockSpec(memory_space=pltpu.MemorySpace.SMEM),
            # Lane-dense, tiled, double-buffered input stream.
            pl.BlockSpec((block_rows, lane), lambda i: (i, 0)),
        ],
        out_specs=pl.BlockSpec((block_rows, lane), lambda i: (i, 0)),
        compiler_params=pltpu.CompilerParams(
            dimension_semantics=("parallel",),
            vmem_limit_bytes=vmem_limit),
    )(w2d, b2d, x2d)

    if padded:
        return out2d.reshape(-1)[:n].reshape(n, 1)
    return out2d.reshape(n, 1)


def logistic_regression_forward(x, w, b, *, min_pallas_elems=1 << 20):
    """Forward pass of LogisticRegressionModel.

    x: (N, 1); w: (1, 1) (out_features, in_features); b: (1,).
    Below ~1M elements, XLA's fused elementwise sigmoid is already at the
    HBM roofline (and fuses with producers/consumers), so the custom-call
    launch cannot pay for itself; larger batches stream through Pallas.
    """
    n = x.shape[0]
    if n < min_pallas_elems:
        return jax.nn.sigmoid(x * w[0, 0] + b[0])
    return _pallas_forward(x, w, b)


if __name__ == "__main__":
    key = jax.random.PRNGKey(0)
    kx, kw, kb = jax.random.split(key, 3)

    # Same parameter shapes as torch.nn.Linear(1, 1):
    # weight (out_features=1, in_features=1), bias (1,);
    # PyTorch init is U(-1/sqrt(fan_in), 1/sqrt(fan_in)) = U(-1, 1) here.
    w = jax.random.uniform(kw, (1, 1), jnp.float32, minval=-1.0, maxval=1.0)
    b = jax.random.uniform(kb, (1,), jnp.float32, minval=-1.0, maxval=1.0)

    def ref(xv):
        return jax.nn.sigmoid(xv * w[0, 0] + b[0])

    # Small batch consistent with the module's forward: (batch, 1).
    # Force the Pallas path (the public wrapper routes tiny batches to XLA).
    x = jax.random.normal(kx, (8, 1), dtype=jnp.float32)
    y = jax.block_until_ready(_pallas_forward(x, w, b))
    assert y.shape == (8, 1)
    assert jnp.allclose(y, ref(x), atol=1e-5, rtol=1e-5), "pallas path mismatch"

    # Batch that is not a multiple of 128 (exercises the padded-tail path).
    x2 = jax.random.normal(kx, (300, 1), dtype=jnp.float32)
    y2 = jax.block_until_ready(_pallas_forward(x2, w, b))
    assert y2.shape == (300, 1)
    assert jnp.allclose(y2, ref(x2), atol=1e-5, rtol=1e-5), "padded path mismatch"

    # Batch that is a multiple of the lane width (zero-copy repack path).
    x3 = jax.random.normal(kx, (1024, 1), dtype=jnp.float32)
    y3 = jax.block_until_ready(_pallas_forward(x3, w, b))
    assert y3.shape == (1024, 1)
    assert jnp.allclose(y3, ref(x3), atol=1e-5, rtol=1e-5), "zero-copy path mismatch"

    # Public wrapper on a tiny batch routes to the fused XLA fallback.
    yw = jax.block_until_ready(logistic_regression_forward(x, w, b))
    assert jnp.allclose(yw, ref(x), atol=1e-6, rtol=1e-6), "fallback mismatch"

    print("KERNEL_OK")
</pallas_src>

<mosaic_0001>
module attributes {stable_mosaic.version = 11 : i64} {
  func.func @_logreg_kernel(%arg0: i32, %arg1: memref<1x1xf32, #tpu.memory_space<smem>>, %arg2: memref<1x1xf32, #tpu.memory_space<smem>>, %arg3: memref<1x128xf32, #tpu.memory_space<vmem>>, %arg4: memref<1x128xf32, #tpu.memory_space<vmem>>) attributes {dimension_semantics = [#tpu.dimension_semantics<parallel>], iteration_bounds = array<i64: 1>, scalar_prefetch = 0 : i64, scratch_operands = 0 : i64, tpu.core_type = #tpu.core_type<tc>, window_params = [{transform_indices = @transform_0, window_bounds = array<i64: 1, 1>}, {transform_indices = @transform_1, window_bounds = array<i64: 1, 1>}, {transform_indices = @transform_2, window_bounds = array<i64: 1, 128>}, {transform_indices = @transform_3, window_bounds = array<i64: 1, 128>}]} {
    %c0 = arith.constant 0 : index
    %c0_0 = arith.constant 0 : index
    %0 = memref.load %arg1[%c0, %c0_0] : memref<1x1xf32, #tpu.memory_space<smem>>
    %c0_1 = arith.constant 0 : index
    %c0_2 = arith.constant 0 : index
    %1 = memref.load %arg2[%c0_1, %c0_2] : memref<1x1xf32, #tpu.memory_space<smem>>
    %c0_3 = arith.constant 0 : index
    %c0_4 = arith.constant 0 : index
    %2 = vector.load %arg3[%c0_3, %c0_4] : memref<1x128xf32, #tpu.memory_space<vmem>>, vector<1x128xf32>
    %3 = vector.broadcast %0 : f32 to vector<1x128xf32>
    %4 = arith.mulf %2, %3 : vector<1x128xf32>
    %5 = vector.broadcast %1 : f32 to vector<1x128xf32>
    %6 = arith.addf %4, %5 : vector<1x128xf32>
    %cst = arith.constant 0.000000e+00 : f32
    %7 = vector.broadcast %cst : f32 to vector<1x128xf32>
    %8 = arith.subf %7, %6 : vector<1x128xf32>
    %9 = math.exp %8 : vector<1x128xf32>
    %cst_5 = arith.constant 1.000000e+00 : f32
    %10 = vector.broadcast %cst_5 : f32 to vector<1x128xf32>
    %11 = arith.addf %10, %9 : vector<1x128xf32>
    %cst_6 = arith.constant 1.000000e+00 : f32
    %12 = vector.broadcast %cst_6 : f32 to vector<1x128xf32>
    %13 = arith.divf %12, %11 : vector<1x128xf32>
    %c0_7 = arith.constant 0 : index
    %c0_8 = arith.constant 0 : index
    %14 = vector.load %arg4[%c0_7, %c0_8] : memref<1x128xf32, #tpu.memory_space<vmem>>, vector<1x128xf32>
    tpu.vector_store %arg4[%c0_7, %c0_8], %13 {strides = array<i32>} : memref<1x128xf32, #tpu.memory_space<vmem>>, vector<1x128xf32>,
    return
  }
  func.func @transform_0(%arg0: i32) -> (i32, i32) {
    %c0_i32 = arith.constant 0 : i32
    %c0_i32_0 = arith.constant 0 : i32
    %c0_i32_1 = arith.constant 0 : i32
    return %c0_i32, %c0_i32_0 : i32, i32
  }
  func.func @transform_1(%arg0: i32) -> (i32, i32) {
    %c0_i32 = arith.constant 0 : i32
    %c0_i32_0 = arith.constant 0 : i32
    %c0_i32_1 = arith.constant 0 : i32
    return %c0_i32, %c0_i32_0 : i32, i32
  }
  func.func @transform_2(%arg0: i32) -> (i32, i32) {
    %c0_i32 = arith.constant 0 : i32
    %c0_i32_0 = arith.constant 0 : i32
    return %arg0, %c0_i32 : i32, i32
  }
  func.func @transform_3(%arg0: i32) -> (i32, i32) {
    %c0_i32 = arith.constant 0 : i32
    %c0_i32_0 = arith.constant 0 : i32
    return %arg0, %c0_i32 : i32, i32
  }
}

</mosaic_0001>

<bundles_post_ra>
// kernel: tpu_custom_call.1
= control target key start
LH: loop header
LB: loop body
LE: loop exit
PB: predicated region body
PF: predicated region fallthrough
CT: control target
= control target key end

     0   :  { %s116_s0 = inlined_call_operand.<no memory space> [shape: f32[1,1], index: 0, kind: input, shape index: {}]   ;;  %s117_s1 = inlined_call_operand.<no memory space> [shape: f32[1,1], index: 1, kind: input, shape index: {}]   ;;  %s118_s2 = inlined_call_operand.vmem [shape: f32[1,128], index: 2, kind: input, shape index: {}]   ;;  %s119_s3 = inlined_call_operand.hbm [shape: f32[1,128], index: 3, kind: output, shape index: {}]  }
   0x1   :  { %v19_v0 = vld [vmem:[%s118_s2] sm:$0x1]  ;;  %v20_v1 = vstv %s116_s0  ;;  %v22_v2 = vstv %s117_s1 }
   0x2   :  { %10 = vsyncpa [#allocation5], 0  ;;  %v21_v3 = vmul.f32 %v20_v1, %v19_v0  ;;  %s74_s18 = smov [#allocation4]  }
   0x3   :  { %s37_s19 = sshll.u32 %s74_s18, 4  ;;  %s38_s19 = int_to_ptr.vmem [resolvable:$true] %s37_s19 }
   0x4   :  { %v23_v4 = vadd.f32 %v22_v2, %v21_v3  ;;  %s50_s2 = scalar_lea.vmem %s38_s19, 16  ;;  %s54_s0 = scalar_lea.vmem %s38_s19, 32 }
   0x5   :  { %p51_p0 = scmp.ne.s32.totalorder %s38_s19, %s50_s2  ;;  %p55_p1 = scmp.lt.s32.totalorder %s38_s19, %s38_s19 }
   0x6   :  { %v24_v5 = vsub.f32 0.0, %v23_v4  ;;  %p56_p2 = scmp.lt.s32.totalorder %s54_s0, %s50_s2 }
   0x8   :  { %v25_v6 = vmul.f32 1.442695, %v24_v5  ;;  %p57_p3 = por %p56_p2, %p55_p1 }
   0xa   :  { %46 = vpow2.f32 %v25_v6  ;;  %p58_p4 = pnand %p57_p3, %p51_p0 }
  0x14   :  { %v47_v7 = vpop.eup %46 }
  0x15   :  { %v27_v8 = vadd.f32 1.0, %v47_v7 }
  0x17   :  { %48 = vrcp.f32 %v27_v8 }
  0x21   :  { %v49_v9 = vpop.eup %48 }
  0x22   :  { %30 = vst [vmem:[#allocation4] sm:$0x1] %v49_v9 }
  0x23   :  { %61 = shalt.err (!%p58_p4)
}
  0x24   :  { %s62_s21 = scalar_lea.hbm %s119_s3, 16 }
  0x25   :  { %p63_p5 = scmp.ne.s32.totalorder %s119_s3, %s62_s21  ;;  %p66_p6 = scmp.lt.u32.totalorder %s62_s21, %s119_s3 }
  0x27   :  { %p68_p7 = pnand %p66_p6, %p63_p5 }
  0x29   :  { %71 = shalt.err (!%p68_p7)
}
  0x2a   :  { %40 = dma.vmem_to_hbm [thread:$0]  %s38_s19, 16, %s119_s3, [#allocation5]  }
  0x2b   :  { %72 = dma.done.wait [#allocation5], 16  }
  0x2c   :  { %73 = vsyncadd [#allocation5], 4294967280 }
  0x2d   :  { %44 = vsyncpa [#allocation5], 1 }

</bundles_post_ra>
